<compile_context>
chip_gen: v7x
topology: tpu7x:2x2x1
jax: 0.10.0
libtpu: 0.0.40
codegen_flags: <defaults>
</compile_context>

<pallas_src>
import math

import jax
import jax.numpy as jnp
import numpy as np
from jax.experimental import pallas as pl
from jax.experimental.pallas import tpu as pltpu


def _diag_gaussian_packed_kernel(x_ref, w_ref, b_ref, mean_ref):
    # x_ref: (tm, R*K) packed rows, w_ref: (R*K, R*N) block-diagonal W^T,
    # b_ref: (1, R*N) tiled bias.  One dense MXU matmul + VPU bias add,
    # lane-dense (unmasked) store of the packed mean tile.
    acc = jnp.dot(x_ref[...], w_ref[...], preferred_element_type=jnp.float32)
    mean_ref[...] = (acc + b_ref[...]).astype(mean_ref.dtype)


def _round_up(x, m):
    return ((x + m - 1) // m) * m


def _pack_factor(num_outputs):
    # Smallest R such that R*num_outputs is a multiple of 128 -> lane-dense
    # mean output (R=16 for num_outputs=8).
    return 128 // math.gcd(128, int(num_outputs))


def diag_gaussian_forward(x, weight, bias, logstd, *,
                          max_packed_rows=2048,
                          min_pallas_batch=1024,
                          use_bf16_inputs=False,
                          materialize_scale=False):
    """x: [B, num_inputs]; weight: [num_outputs, num_inputs];
    bias, logstd: [num_outputs].

    Returns (mean [B, num_outputs], scale).  scale is the batch-invariant
    exp(logstd) as a broadcastable [1, num_outputs] array (identical Normal
    distribution semantics); pass materialize_scale=True for a dense [B, N]."""
    batch, num_inputs = x.shape
    num_outputs = weight.shape[0]
    out_dtype = x.dtype

    # scale = exp(logstd) is batch-invariant: keep it O(N), no HBM writeback.
    scale = jnp.exp(logstd).reshape(1, num_outputs).astype(out_dtype)
    if materialize_scale:
        scale = jnp.broadcast_to(scale, (batch, num_outputs))

    # Small-batch fast path: a plain-JAX GEMV fuses with surrounding ops and
    # skips the pallas_call fixed dispatch / per-step cost.
    if batch < min_pallas_batch:
        mean = (x @ weight.T + bias).astype(out_dtype)
        return mean, scale

    R = _pack_factor(num_outputs)

    # Minimal pad (< R rows) so rows pack R-at-a-time.  This replaces the old
    # tile-sized pad that could re-read/write up to ~60% extra HBM traffic.
    b_pad = _round_up(batch, R)
    if b_pad != batch:
        x = jnp.pad(x, ((0, b_pad - batch), (0, 0)))
    packed_rows = b_pad // R

    # Lane-dense packing: pure row-major reshape of x; block-diagonal weight and
    # tiled bias built once in the wrapper (tiny: R*K x R*N = 512x128 f32).
    x_pack = x.reshape(packed_rows, R * num_inputs)
    w_blk = jnp.kron(jnp.eye(R, dtype=weight.dtype), weight.T)     # (R*K, R*N)
    b_blk = jnp.tile(bias, R).reshape(1, R * num_outputs)

    in_dtype = jnp.bfloat16 if use_bf16_inputs else x_pack.dtype
    x_pack = x_pack.astype(in_dtype)
    w_blk = w_blk.astype(in_dtype)
    b_blk = b_blk.astype(jnp.float32)

    # Balanced row tiles (multiple of 8 sublanes).  The final ragged block is
    # handled by Pallas boundary masking, so no pre-pad to the tile size.
    if packed_rows <= max_packed_rows:
        tm = packed_rows                    # == full dim -> always a legal block
    else:
        ntiles = pl.cdiv(packed_rows, max_packed_rows)
        tm = _round_up(pl.cdiv(packed_rows, ntiles), 8)
    grid = (pl.cdiv(packed_rows, tm),)

    kp = R * num_inputs                     # packed contraction dim (512)
    npk = R * num_outputs                   # packed output lanes (128)
    in_item = jnp.dtype(in_dtype).itemsize
    out_item = jnp.dtype(out_dtype).itemsize
    cost = pl.CostEstimate(
        flops=2 * packed_rows * kp * npk,   # dense MXU work (block-diag zeros incl.)
        transcendentals=0,
        bytes_accessed=(packed_rows * kp * in_item       # x read (lane-dense)
                        + kp * npk * in_item             # W_blk read (resident)
                        + npk * 4                        # bias read
                        + packed_rows * npk * out_item), # mean write (lane-dense)
    )

    mean_pack = pl.pallas_call(
        _diag_gaussian_packed_kernel,
        out_shape=jax.ShapeDtypeStruct((packed_rows, npk), out_dtype),
        grid=grid,
        in_specs=[
            pl.BlockSpec((tm, kp), lambda i: (i, 0)),    # x: streamed, double-buffered
            pl.BlockSpec((kp, npk), lambda i: (0, 0)),   # W_blk: resident
            pl.BlockSpec((1, npk), lambda i: (0, 0)),    # bias: resident
        ],
        out_specs=pl.BlockSpec((tm, npk), lambda i: (i, 0)),
        compiler_params=pltpu.CompilerParams(
            # TODO(synk): try pltpu.CORE_PARALLEL here on v7x (2 TensorCores).
            dimension_semantics=("parallel",),
            vmem_limit_bytes=32 * 1024 * 1024,           # safe on v5e/v6e/v7x
        ),
        cost_estimate=cost,
    )(x_pack, w_blk, b_blk)

    mean = mean_pack.reshape(b_pad, num_outputs)
    if b_pad != batch:
        mean = mean[:batch]
    return mean, scale


def _orthogonal_init(key, shape, gain):
    """Deterministic equivalent of nn.init.orthogonal_ (QR of a normal matrix)."""
    rows, cols = shape
    a = jax.random.normal(key, (max(rows, cols), min(rows, cols)), dtype=jnp.float32)
    q, r = jnp.linalg.qr(a)
    q = q * jnp.sign(jnp.diag(r))  # deterministic sign convention
    if rows < cols:
        q = q.T
    return gain * q[:rows, :cols]


if __name__ == "__main__":
    num_inputs, num_outputs = 32, 8
    gain = 0.01

    key = jax.random.PRNGKey(0)
    k_w, k_x = jax.random.split(key)

    # Parameters (deterministic, mirroring DiagGaussian.__init__):
    weight = _orthogonal_init(k_w, (num_outputs, num_inputs), gain)  # fc_mean.weight
    bias = jnp.zeros((num_outputs,), jnp.float32)                    # fc_mean.bias = 0
    logstd = jnp.zeros((num_outputs,), jnp.float32)                  # AddBias(zeros)

    # (batch, force Pallas path): exact pack multiple, non-multiple-of-16 (pads
    # 8 rows, exercises slice-off), and the small-batch plain-JAX fast path.
    for batch, force_pallas in ((16, True), (1000, True), (5, False)):
        x = jax.random.normal(jax.random.fold_in(k_x, batch),
                              (batch, num_inputs), dtype=jnp.float32)
        mean, scale = diag_gaussian_forward(
            x, weight, bias, logstd,
            min_pallas_batch=0 if force_pallas else 1024)
        jax.block_until_ready((mean, scale))

        # Reference check against plain JAX
        mean_ref = x @ weight.T + bias
        scale_ref = jnp.exp(logstd).reshape(1, num_outputs)
        np.testing.assert_allclose(np.asarray(mean), np.asarray(mean_ref),
                                   rtol=1e-5, atol=1e-5)
        np.testing.assert_allclose(np.asarray(scale), np.asarray(scale_ref),
                                   rtol=1e-6, atol=1e-6)

    print("KERNEL_OK")
</pallas_src>

<mosaic_0001>
module attributes {stable_mosaic.version = 11 : i64} {
  func.func @_diag_gaussian_packed_kernel(%arg0: i32, %arg1: memref<1x512xf32, #tpu.memory_space<vmem>>, %arg2: memref<512x128xf32, #tpu.memory_space<vmem>>, %arg3: memref<1x128xf32, #tpu.memory_space<vmem>>, %arg4: memref<1x128xf32, #tpu.memory_space<vmem>>) attributes {dimension_semantics = [#tpu.dimension_semantics<parallel>], iteration_bounds = array<i64: 1>, scalar_prefetch = 0 : i64, scratch_operands = 0 : i64, tpu.core_type = #tpu.core_type<tc>, window_params = [{transform_indices = @transform_0, window_bounds = array<i64: 1, 512>}, {pipeline_mode = #tpu.pipeline_mode<synchronous>, transform_indices = @transform_1, window_bounds = array<i64: 512, 128>}, {pipeline_mode = #tpu.pipeline_mode<synchronous>, transform_indices = @transform_2, window_bounds = array<i64: 1, 128>}, {transform_indices = @transform_3, window_bounds = array<i64: 1, 128>}]} {
    %c0 = arith.constant 0 : index
    %c0_0 = arith.constant 0 : index
    %0 = vector.load %arg1[%c0, %c0_0] : memref<1x512xf32, #tpu.memory_space<vmem>>, vector<1x512xf32>
    %c0_1 = arith.constant 0 : index
    %c0_2 = arith.constant 0 : index
    %1 = vector.load %arg2[%c0_1, %c0_2] : memref<512x128xf32, #tpu.memory_space<vmem>>, vector<512x128xf32>
    %cst = arith.constant dense<0.000000e+00> : vector<1x128xf32>
    %2 = tpu.matmul %0, %1, %cst {dimension_numbers = #tpu.dot_dimension_numbers<[1], [0], [0], [1], [0, 0, 1, 1], [], []>} : vector<1x512xf32>, vector<512x128xf32>, vector<1x128xf32> -> vector<1x128xf32>
    %c0_3 = arith.constant 0 : index
    %c0_4 = arith.constant 0 : index
    %3 = vector.load %arg3[%c0_3, %c0_4] : memref<1x128xf32, #tpu.memory_space<vmem>>, vector<1x128xf32>
    %4 = arith.addf %2, %3 : vector<1x128xf32>
    %c0_5 = arith.constant 0 : index
    %c0_6 = arith.constant 0 : index
    %5 = vector.load %arg4[%c0_5, %c0_6] : memref<1x128xf32, #tpu.memory_space<vmem>>, vector<1x128xf32>
    tpu.vector_store %arg4[%c0_5, %c0_6], %4 {strides = array<i32>} : memref<1x128xf32, #tpu.memory_space<vmem>>, vector<1x128xf32>,
    return
  }
  func.func @transform_0(%arg0: i32) -> (i32, i32) {
    %c0_i32 = arith.constant 0 : i32
    %c0_i32_0 = arith.constant 0 : i32
    return %arg0, %c0_i32 : i32, i32
  }
  func.func @transform_1(%arg0: i32) -> (i32, i32) {
    %c0_i32 = arith.constant 0 : i32
    %c0_i32_0 = arith.constant 0 : i32
    %c0_i32_1 = arith.constant 0 : i32
    return %c0_i32, %c0_i32_0 : i32, i32
  }
  func.func @transform_2(%arg0: i32) -> (i32, i32) {
    %c0_i32 = arith.constant 0 : i32
    %c0_i32_0 = arith.constant 0 : i32
    %c0_i32_1 = arith.constant 0 : i32
    return %c0_i32, %c0_i32_0 : i32, i32
  }
  func.func @transform_3(%arg0: i32) -> (i32, i32) {
    %c0_i32 = arith.constant 0 : i32
    %c0_i32_0 = arith.constant 0 : i32
    return %arg0, %c0_i32 : i32, i32
  }
}

</mosaic_0001>

<bundles_post_ra>
// kernel: tpu_custom_call.1
= control target key start
LH: loop header
LB: loop body
LE: loop exit
PB: predicated region body
PF: predicated region fallthrough
CT: control target
= control target key end

     0   :  { %8 = vsyncpa [#allocation3], 0  ;;  %s573_s0 = inlined_call_operand.hbm [shape: f32[1,512], index: 0, kind: input, shape index: {}]   ;;  %s574_s1 = inlined_call_operand.hbm [shape: f32[512,128], index: 1, kind: input, shape index: {}]   ;;  %s575_s2 = inlined_call_operand.vmem [shape: f32[1,128], index: 2, kind: input, shape index: {}]   ;;  %s576_s3 = inlined_call_operand.hbm [shape: f32[1,128], index: 3, kind: output, shape index: {}]  }
   0x1   :  { %9 = vsyncpa [#allocation6], 0 }
   0x2   :  { %10 = vsyncpa [#allocation4], 0  ;;  %s496_s12 = smov [#allocation2]   ;;  %s497_s14 = smov [#allocation5]  }
   0x3   :  { %s17_s13 = sshll.u32 %s496_s12, 4  ;;  %s26_s15 = sshll.u32 %s497_s14, 4  ;;  %s18_s13 = int_to_ptr.vmem [resolvable:$true] %s17_s13  ;;  %s521_s15 = int_to_ptr.vmem [resolvable:$true] %s26_s15 }
   0x4   :  { %s424_s18 = scalar_lea.hbm %s573_s0, 64 }
   0x5   :  { %p425_p0 = scmp.ne.s32.totalorder %s573_s0, %s424_s18  ;;  %p428_p1 = scmp.lt.u32.totalorder %s424_s18, %s573_s0 }
   0x7   :  { %p430_p2 = pnand %p428_p1, %p425_p0 }
   0x9   :  { %433 = shalt.err (!%p430_p2)
}
   0xa   :  { %s434_s23 = scalar_lea.vmem %s18_s13, 64  ;;  %p439_p4 = scmp.lt.s32.totalorder %s18_s13, %s18_s13 }
   0xb   :  { %p435_p3 = scmp.ne.s32.totalorder %s18_s13, %s434_s23  ;;  %p440_p5 = scmp.lt.s32.totalorder %s434_s23, %s434_s23 }
   0xd   :  { %p441_p6 = por %p440_p5, %p439_p4 }
   0xf   :  { %p442_p7 = pnand %p441_p6, %p435_p3 }
  0x11   :  { %445 = shalt.err (!%p442_p7)
}
  0x12   :  { %20 = dma.hbm_to_vmem [thread:$0]  %s573_s0, 64, %s18_s13, [#allocation3]  }
  0x13   :  { %s446_s28 = scalar_lea.hbm %s574_s1, 8192 }
  0x14   :  { %p447_p8 = scmp.ne.s32.totalorder %s574_s1, %s446_s28  ;;  %p450_p9 = scmp.lt.u32.totalorder %s446_s28, %s574_s1 }
  0x16   :  { %p452_p10 = pnand %p450_p9, %p447_p8 }
  0x18   :  { %455 = shalt.err (!%p452_p10)
}
  0x19   :  { %s456_s6 = scalar_lea.vmem %s521_s15, 8192  ;;  %p461_p12 = scmp.lt.s32.totalorder %s521_s15, %s521_s15 }
  0x1a   :  { %p457_p11 = scmp.ne.s32.totalorder %s521_s15, %s456_s6  ;;  %p462_p13 = scmp.lt.s32.totalorder %s456_s6, %s456_s6 }
  0x1c   :  { %p463_p0 = por %p462_p13, %p461_p12 }
  0x1e   :  { %p464_p1 = pnand %p463_p0, %p457_p11 }
  0x20   :  { %467 = shalt.err (!%p464_p1)
}
  0x21   :  { %s498_s0 = smov 128   ;;  %s499_s7 = smov 8  }
  0x22   :  { %32 = dma.hbm_to_vmem [thread:$0]  %s574_s1, 8192, %s521_s15, [#allocation6], %s498_s0, %s498_s0, %s499_s7  }
  0x23   :  { %490 = dma.done.wait [#allocation3], 64  }
  0x24   :  { %491 = vsyncadd [#allocation3], 4294967232 }
  0x25   :  { %492 = dma.done.wait [#allocation6], 8192  }
  0x26   :  { %493 = vsyncadd [#allocation6], 4294959104  ;;  %v58_v0 = vld [vmem:[#allocation5 + $0x80] sm:$0xff]  ;;  %v59_v1 = vld [vmem:[#allocation5 + $0x88] sm:$0xff]  ;;  %v108_v47 = vlaneseq  ;;  %s500_s11 = smov [#allocation7]  }
  0x27   :  { %v42_v2 = vld [vmem:[#allocation5] sm:$0xff]  ;;  %v355_v3 = vpack.c.bf16 %v59_v1, %v58_v0  ;;  %v43_v4 = vld [vmem:[#allocation5 + $0x8] sm:$0xff]  ;;  %v60_v11 = vld [vmem:[#allocation5 + $0x90] sm:$0xff]  ;;  %s275_s12 = sshll.u32 %s500_s11, 4  ;;  %s276_s12 = int_to_ptr.vmem [resolvable:$true] %s275_s12 }
  0x28   :  { %v90_v5 = vld [vmem:[#allocation5 + $0x180] sm:$0xff]  ;;  %v91_v6 = vld [vmem:[#allocation5 + $0x188] sm:$0xff]  ;;  %v357_v7 = vpack.c.bf16 %v43_v4, %v42_v2  ;;  %v61_v13 = vld [vmem:[#allocation5 + $0x98] sm:$0xff]  ;;  %v552_v61 = vshrl.u32 %v108_v47, 7  ;;  %s468_s13 = scalar_lea.vmem %s276_s12, 16  ;;  %s472_s14 = scalar_lea.vmem %s276_s12, 32 }
  0x29   :  { %v387_v8 = vpack.c.bf16 %v91_v6, %v90_v5  ;;  %v74_v9 = vld [vmem:[#allocation5 + $0x100] sm:$0xff]  ;;  %v75_v10 = vld [vmem:[#allocation5 + $0x108] sm:$0xff]  ;;  %356 = vmatprep.subr.bf16.mxu0 %v355_v3  ;;  %v44_v14 = vld [vmem:[#allocation5 + $0x10] sm:$0xff]  ;;  %v359_v16 = vpack.c.bf16 %v61_v13, %v60_v11  ;;  %p469_p2 = scmp.ne.s32.totalorder %s276_s12, %s468_s13  ;;  %p473_p3 = scmp.lt.s32.totalorder %s276_s12, %s276_s12 }
  0x2a   :  { %v389_v12 = vpack.c.bf16 %v75_v10, %v74_v9  ;;  %v45_v15 = vld [vmem:[#allocation5 + $0x18] sm:$0xff]  ;;  %358 = vmatpush3.bf16.msra.mxu0 %v357_v7  ;;  %v92_v18 = vld [vmem:[#allocation5 + $0x190] sm:$0xff]  ;;  %v62_v23 = vld [vmem:[#allocation5 + $0xa0] sm:$0xff]  ;;  %v114_v10 = vsub.s32 1, %v552_v61  ;;  %v122_v11 = vsub.s32 3, %v552_v61  ;;  %p474_p4 = scmp.lt.s32.totalorder %s472_s14, %s468_s13 }
  0x2b   :  { %388 = vmatprep.subr.bf16.mxu1 %v387_v8  ;;  %v361_v17 = vpack.c.bf16 %v45_v15, %v44_v14  ;;  %v93_v19 = vld [vmem:[#allocation5 + $0x198] sm:$0xff]  ;;  %v76_v20 = vld [vmem:[#allocation5 + $0x110] sm:$0xff]  ;;  %v63_v24 = vld [vmem:[#allocation5 + $0xa8] sm:$0xff]  ;;  %360 = vmatprep.subr.bf16.mxu0 %v359_v16 }
  0x2c   :  { %390 = vmatpush3.bf16.msra.mxu1 %v389_v12  ;;  %v391_v21 = vpack.c.bf16 %v93_v19, %v92_v18  ;;  %v77_v22 = vld [vmem:[#allocation5 + $0x118] sm:$0xff]  ;;  %v363_v26 = vpack.c.bf16 %v63_v24, %v62_v23  ;;  %v46_v27 = vld [vmem:[#allocation5 + $0x20] sm:$0xff]  ;;  %v47_v28 = vld [vmem:[#allocation5 + $0x28] sm:$0xff]  ;;  %p475_p5 = por %p474_p4, %p473_p3 }
  0x2d   :  { %v393_v25 = vpack.c.bf16 %v77_v22, %v76_v20  ;;  %v94_v29 = vld [vmem:[#allocation5 + $0x1a0] sm:$0xff]  ;;  %v95_v30 = vld [vmem:[#allocation5 + $0x1a8] sm:$0xff]  ;;  %v365_v33 = vpack.c.bf16 %v47_v28, %v46_v27  ;;  %v64_v35 = vld [vmem:[#allocation5 + $0xb0] sm:$0xff] }
  0x2e   :  { %392 = vmatprep.subr.bf16.mxu1 %v391_v21  ;;  %v78_v31 = vld [vmem:[#allocation5 + $0x120] sm:$0xff]  ;;  %v79_v32 = vld [vmem:[#allocation5 + $0x128] sm:$0xff]  ;;  %362 = vmatpush3.bf16.msra.mxu0 %v361_v17  ;;  %v395_v34 = vpack.c.bf16 %v95_v30, %v94_v29  ;;  %v65_v36 = vld [vmem:[#allocation5 + $0xb8] sm:$0xff]  ;;  %p476_p6 = pnand %p475_p5, %p469_p2 }
  0x2f   :  { %v48_v37 = vld [vmem:[#allocation5 + $0x30] sm:$0xff]  ;;  %364 = vmatprep.subr.bf16.mxu0 %v363_v26  ;;  %v397_v38 = vpack.c.bf16 %v79_v32, %v78_v31  ;;  %v367_v39 = vpack.c.bf16 %v65_v36, %v64_v35  ;;  %v49_v40 = vld [vmem:[#allocation5 + $0x38] sm:$0xff]  ;;  %v66_v46 = vld [vmem:[#allocation5 + $0xc0] sm:$0xff] }
  0x30   :  { %394 = vmatpush3.bf16.msra.mxu1 %v393_v25  ;;  %v96_v41 = vld [vmem:[#allocation5 + $0x1b0] sm:$0xff]  ;;  %v97_v42 = vld [vmem:[#allocation5 + $0x1b8] sm:$0xff]  ;;  %v67_v48 = vld [vmem:[#allocation5 + $0xc8] sm:$0xff]  ;;  %v369_v49 = vpack.c.bf16 %v49_v40, %v48_v37  ;;  %v110_v37 = vsub.s32 0, %v552_v61 }
  0x31   :  { %396 = vmatprep.subr.bf16.mxu1 %v395_v34  ;;  %v399_v43 = vpack.c.bf16 %v97_v42, %v96_v41  ;;  %v80_v44 = vld [vmem:[#allocation5 + $0x130] sm:$0xff]  ;;  %v81_v45 = vld [vmem:[#allocation5 + $0x138] sm:$0xff]  ;;  %v98_v50 = vld [vmem:[#allocation5 + $0x1c0] sm:$0xff]  ;;  %v371_v53 = vpack.c.bf16 %v67_v48, %v66_v46 }
  0x32   :  { %366 = vmatpush3.bf16.msra.mxu0 %v365_v33  ;;  %v99_v51 = vld [vmem:[#allocation5 + $0x1c8] sm:$0xff]  ;;  %v401_v52 = vpack.c.bf16 %v81_v45, %v80_v44  ;;  %v50_v54 = vld [vmem:[#allocation5 + $0x40] sm:$0xff]  ;;  %v68_v59 = vld [vmem:[#allocation5 + $0xd0] sm:$0xff] }
  0x33   :  { %368 = vmatprep.subr.bf16.mxu0 %v367_v39  ;;  %v51_v55 = vld [vmem:[#allocation5 + $0x48] sm:$0xff]  ;;  %v82_v56 = vld [vmem:[#allocation5 + $0x140] sm:$0xff]  ;;  %v403_v57 = vpack.c.bf16 %v99_v51, %v98_v50  ;;  %v69_v60 = vld [vmem:[#allocation5 + $0xd8] sm:$0xff]  ;;  %v118_v39 = vsub.s32 2, %v552_v61 }
  0x34   :  { %398 = vmatpush3.bf16.msra.mxu1 %v397_v38  ;;  %v83_v58 = vld [vmem:[#allocation5 + $0x148] sm:$0xff]  ;;  %v100_v62 = vld [vmem:[#allocation5 + $0x1d0] sm:$0xff]  ;;  %v101_v63 = vld [vmem:[#allocation5 + $0x1d8] sm:$0xff]  ;;  %v373_v0 = vpack.c.bf16 %v51_v55, %v50_v54  ;;  %v375_v2 = vpack.c.bf16 %v69_v60, %v68_v59 }
  0x35   :  { %400 = vmatprep.subr.bf16.mxu1 %v399_v43  ;;  %v405_v1 = vpack.c.bf16 %v83_v58, %v82_v56  ;;  %v52_v3 = vld [vmem:[#allocation5 + $0x50] sm:$0xff]  ;;  %v53_v4 = vld [vmem:[#allocation5 + $0x58] sm:$0xff]  ;;  %v407_v6 = vpack.c.bf16 %v101_v63, %v100_v62  ;;  %v70_v8 = vld [vmem:[#allocation5 + $0xe0] sm:$0xff] }
  0x36   :  { %370 = vmatpush3.bf16.msra.mxu0 %v369_v49  ;;  %v84_v5 = vld [vmem:[#allocation5 + $0x150] sm:$0xff]  ;;  %v85_v7 = vld [vmem:[#allocation5 + $0x158] sm:$0xff]  ;;  %v71_v9 = vld [vmem:[#allocation5 + $0xe8] sm:$0xff]  ;;  %v377_v14 = vpack.c.bf16 %v53_v4, %v52_v3 }
  0x37   :  { %372 = vmatprep.subr.bf16.mxu0 %v371_v53  ;;  %v102_v12 = vld [vmem:[#allocation5 + $0x1e0] sm:$0xff]  ;;  %v103_v13 = vld [vmem:[#allocation5 + $0x1e8] sm:$0xff]  ;;  %v409_v16 = vpack.c.bf16 %v85_v7, %v84_v5  ;;  %v379_v17 = vpack.c.bf16 %v71_v9, %v70_v8  ;;  %v41_v20 = vld [vmem:[#allocation2] sm:$0xf] }
  0x38   :  { %402 = vmatpush3.bf16.msra.mxu1 %v401_v52  ;;  %v54_v15 = vld [vmem:[#allocation5 + $0x60] sm:$0xff]  ;;  %v55_v18 = vld [vmem:[#allocation5 + $0x68] sm:$0xff]  ;;  %v411_v21 = vpack.c.bf16 %v103_v13, %v102_v12  ;;  %v72_v23 = vld [vmem:[#allocation5 + $0xf0] sm:$0xff]  ;;  %v115_v25 = vrot.slane %v41_v20, %v114_v10  ;;  %v123_v26 = vrot.slane %v41_v20, %v122_v11  ;;  %v111_v41 = vrot.slane %v41_v20, %v110_v37 }
  0x39   :  { %404 = vmatprep.subr.bf16.mxu1 %v403_v57  ;;  %v86_v19 = vld [vmem:[#allocation5 + $0x160] sm:$0xff]  ;;  %v87_v22 = vld [vmem:[#allocation5 + $0x168] sm:$0xff]  ;;  %v73_v24 = vld [vmem:[#allocation5 + $0xf8] sm:$0xff]  ;;  %v381_v29 = vpack.c.bf16 %v55_v18, %v54_v15  ;;  %v119_v42 = vrot.slane %v41_v20, %v118_v39 }
  0x3a   :  { %374 = vmatpush3.bf16.msra.mxu0 %v373_v0  ;;  %v104_v27 = vld [vmem:[#allocation5 + $0x1f0] sm:$0xff]  ;;  %v105_v28 = vld [vmem:[#allocation5 + $0x1f8] sm:$0xff]  ;;  %192 = vmatprep.mubr.f32.mxu0 %v115_v25  ;;  %v413_v30 = vpack.c.bf16 %v87_v22, %v86_v19  ;;  %v383_v31 = vpack.c.bf16 %v73_v24, %v72_v23 }
  0x3b   :  { %376 = vmatprep.subr.bf16.mxu0 %v375_v2  ;;  %v56_v32 = vld [vmem:[#allocation5 + $0x70] sm:$0xff]  ;;  %v57_v33 = vld [vmem:[#allocation5 + $0x78] sm:$0xff]  ;;  %v415_v34 = vpack.c.bf16 %v105_v28, %v104_v27  ;;  %262 = vmatprep.mubr.f32.mxu1 %v123_v26 }
  0x3c   :  { %406 = vmatpush3.bf16.msra.mxu1 %v405_v1  ;;  %v88_v35 = vld [vmem:[#allocation5 + $0x170] sm:$0xff]  ;;  %v89_v36 = vld [vmem:[#allocation5 + $0x178] sm:$0xff]  ;;  %v385_v38 = vpack.c.bf16 %v57_v33, %v56_v32 }
  0x3d   :  { %408 = vmatprep.subr.bf16.mxu1 %v407_v6  ;;  %v417_v40 = vpack.c.bf16 %v89_v36, %v88_v35  ;;  %v106_v44 = vld [vmem:[%s575_s2] sm:$0x1] }
  0x3e   :  { %378 = vmatpush3.bf16.msra.mxu0 %v377_v14 }
  0x3f   :  { %380 = vmatprep.subr.bf16.mxu0 %v379_v17 }
  0x40   :  { %410 = vmatpush3.bf16.msra.mxu1 %v409_v16 }
  0x41   :  { %412 = vmatprep.subr.bf16.mxu1 %v411_v21 }
  0x42   :  { %382 = vmatpush3.bf16.msra.mxu0 %v381_v29 }
  0x43   :  { %384 = vmatprep.subr.bf16.mxu0 %v383_v31 }
  0x44   :  { %414 = vmatpush3.bf16.msra.mxu1 %v413_v30 }
  0x45   :  { %416 = vmatprep.subr.bf16.mxu1 %v415_v34 }
  0x46   :  { %386 = vmatpush3.bf16.msra.mxu0 %v385_v38 }
  0x48   :  { %418 = vmatpush3.bf16.msra.mxu1 %v417_v40 }
  0x49   :  { %193 = vmatmul.mubr.f32.vlgmr.msra.gmra.mrb[0].mxu0 %v111_v41 }
  0x4b   :  { %263 = vmatmul.mubr.f32.vlgmr.msra.gmra.mrb[0].mxu1 %v119_v42 }
 0x11c   :  { %v317_v43 = vpop.f32.mrb[0].mxu0 }
 0x11d   :  { %v318_v45 = vpop.f32.mrb[1].mxu0 }
 0x11e   :  { %v352_v46 = vpop.f32.mrb[0].mxu1  ;;  %v319_v47 = vadd.f32 %v318_v45, %v317_v43 }
 0x11f   :  { %v353_v48 = vpop.f32.mrb[1].mxu1 }
 0x120   :  { %v354_v49 = vadd.f32 %v353_v48, %v352_v46  ;;  %v195_v50 = vadd.f32 %v319_v47, %v106_v44 }
 0x122   :  { %v265_v51 = vadd.f32 %v354_v49, %v195_v50 }
 0x124   :  { %268 = vst [vmem:[#allocation7] sm:$0x1] %v265_v51 }
 0x125   :  { %479 = shalt.err (!%p476_p6)
}
 0x126   :  { %s480_s16 = scalar_lea.hbm %s576_s3, 16 }
 0x127   :  { %p481_p7 = scmp.ne.s32.totalorder %s576_s3, %s480_s16  ;;  %p484_p8 = scmp.lt.u32.totalorder %s480_s16, %s576_s3 }
 0x129   :  { %p486_p9 = pnand %p484_p8, %p481_p7 }
 0x12b   :  { %489 = shalt.err (!%p486_p9)
}
 0x12c   :  { %278 = dma.vmem_to_hbm [thread:$0]  %s276_s12, 16, %s576_s3, [#allocation4]  }
 0x12d   :  { %494 = dma.done.wait [#allocation4], 16  }
 0x12e   :  { %495 = vsyncadd [#allocation4], 4294967280 }
 0x12f   :  { %282 = vsyncpa [#allocation3], 1 }
 0x130   :  { %283 = vsyncpa [#allocation6], 1 }
 0x131   :  { %284 = vsyncpa [#allocation4], 1 }

</bundles_post_ra>
